<compile_context>
chip_gen: v7x
topology: tpu7x:2x2x1
jax: 0.10.0
libtpu: 0.0.40
codegen_flags: <defaults>
</compile_context>

<pallas_src>
import functools

import jax
import jax.numpy as jnp
from jax.experimental import pallas as pl
from jax.experimental.pallas import tpu as pltpu

NEG_INF = -1e30


def _round_up(v, m):
    return (v + m - 1) // m * m


def global_sa_kernel(x_ref, pos_ref, batch_ref, w1x_ref, w1p_ref, b1_ref,
                     w2_ref, b2_ref, out_ref, *, n_points):
    """One point-tile of the fused MLP + per-graph running max pool.

    x_ref    : [TN, Cin]  bf16   point features (tile i)
    pos_ref  : [TN, 3]    bf16   point positions (tile i)
    batch_ref: [TN, 1]    i32    graph id per point (values in [0, B))
    w1x_ref  : [Cin, H1]  bf16   first-layer weights for the x rows
    w1p_ref  : [3,  H1]   bf16   first-layer weights for the pos rows
    b1_ref   : [1, H1]    f32
    w2_ref   : [H1, H2p]  bf16   (H2 zero-padded up to a multiple of 128 lanes)
    b2_ref   : [1, H2p]   f32
    out_ref  : [B, H2p]   f32    running per-graph max (grid-resident accumulator)
    """
    i = pl.program_id(0)
    tile_n = x_ref.shape[0]
    num_graphs = out_ref.shape[0]

    @pl.when(i == 0)
    def _init():
        out_ref[...] = jnp.full(out_ref.shape, NEG_INF, jnp.float32)

    # --- fused MLP: cat([x, pos]) @ W1 == x @ W1[:Cin] + pos @ W1[Cin:] ---
    h = jnp.dot(x_ref[...], w1x_ref[...], preferred_element_type=jnp.float32)
    h = h + jnp.dot(pos_ref[...], w1p_ref[...], preferred_element_type=jnp.float32)
    h = jnp.maximum(h + b1_ref[...], 0.0)                         # [TN, H1]  f32
    h = jnp.dot(h.astype(jnp.bfloat16), w2_ref[...],
                preferred_element_type=jnp.float32)
    h = jnp.maximum(h + b2_ref[...], 0.0)                         # [TN, H2p] f32

    # --- per-graph running max over this tile (folded into the N-tile loop) ---
    bids = batch_ref[...]                                         # [TN, 1] i32
    row = i * tile_n + jax.lax.broadcasted_iota(jnp.int32, (tile_n, 1), 0)
    valid = row < n_points                                        # mask ragged last tile
    h_valid = jnp.where(valid, h, NEG_INF)                        # mask once, reuse per graph

    out_rows = jax.lax.broadcasted_iota(jnp.int32, out_ref.shape, 0)   # [B, H2p]
    tile_max = jnp.full(out_ref.shape, NEG_INF, jnp.float32)
    for b in range(num_graphs):                                   # B is small & static
        m_b = jnp.max(jnp.where(bids == b, h_valid, NEG_INF),
                      axis=0, keepdims=True)                      # [1, H2p]
        tile_max = jnp.where(out_rows == b, m_b, tile_max)
    # single lane-dense full-block store/accumulate
    out_ref[...] = jnp.maximum(out_ref[...], tile_max)


def global_sa_module(x, pos, batch, params, num_graphs, *, tile_n=512):
    """JAX wrapper reproducing GlobalSAModule.forward (x, pos, batch) -> (x, pos, batch)."""
    w1, b1, w2, b2 = params
    n, cin = x.shape
    h1 = w1.shape[1]
    h2 = w2.shape[1]
    h2p = _round_up(h2, 128)                       # lane-dense output / 2nd matmul

    # Tile the point dim; clamp for tiny inputs (TN multiple of 8 or full extent).
    tn = min(tile_n, _round_up(n, 8))
    grid = (pl.cdiv(n, tn),)

    # Pre-split / pre-pad parameters (tiny one-time work outside the kernel).
    w1x = w1[:cin].astype(jnp.bfloat16)            # [Cin, H1]
    w1p = w1[cin:].astype(jnp.bfloat16)            # [3,   H1]
    b1r = b1.reshape(1, h1).astype(jnp.float32)
    w2p = jnp.zeros((h1, h2p), jnp.bfloat16).at[:, :h2].set(w2.astype(jnp.bfloat16))
    b2p = jnp.zeros((1, h2p), jnp.float32).at[:, :h2].set(b2.astype(jnp.float32))

    xb = x.astype(jnp.bfloat16)                    # halves HBM read traffic
    pb = pos.astype(jnp.bfloat16)
    batch2d = batch.astype(jnp.int32).reshape(n, 1)

    kernel = functools.partial(global_sa_kernel, n_points=n)

    pooled = pl.pallas_call(
        kernel,
        out_shape=jax.ShapeDtypeStruct((num_graphs, h2p), jnp.float32),
        grid_spec=pltpu.PrefetchScalarGridSpec(
            num_scalar_prefetch=0,
            grid=grid,
            in_specs=[
                pl.BlockSpec((tn, cin), lambda i: (i, 0)),   # x tile
                pl.BlockSpec((tn, 3), lambda i: (i, 0)),     # pos tile
                pl.BlockSpec((tn, 1), lambda i: (i, 0)),     # batch ids tile
                pl.BlockSpec((cin, h1), lambda i: (0, 0)),   # weights pinned in VMEM
                pl.BlockSpec((3, h1), lambda i: (0, 0)),
                pl.BlockSpec((1, h1), lambda i: (0, 0)),
                pl.BlockSpec((h1, h2p), lambda i: (0, 0)),
                pl.BlockSpec((1, h2p), lambda i: (0, 0)),
            ],
            out_specs=pl.BlockSpec((num_graphs, h2p), lambda i: (0, 0)),
        ),
        compiler_params=pltpu.CompilerParams(
            dimension_semantics=("arbitrary",)),   # max-accumulation axis
    )(xb, pb, batch2d, w1x, w1p, b1r, w2p, b2p)

    pooled = pooled[:, :h2]
    pos_out = jnp.zeros((num_graphs, 3), dtype=pos.dtype)
    batch_out = jnp.arange(num_graphs, dtype=jnp.int32)
    return pooled, pos_out, batch_out


def _reference(x, pos, batch, params, num_graphs):
    """Pure-JAX reference mirroring the kernel's bf16-matmul / f32-accum scheme."""
    w1, b1, w2, b2 = params
    cin = x.shape[1]
    h = (jnp.dot(x.astype(jnp.bfloat16), w1[:cin].astype(jnp.bfloat16),
                 preferred_element_type=jnp.float32)
         + jnp.dot(pos.astype(jnp.bfloat16), w1[cin:].astype(jnp.bfloat16),
                   preferred_element_type=jnp.float32))
    h = jnp.maximum(h + b1.astype(jnp.float32), 0.0)
    h = jnp.dot(h.astype(jnp.bfloat16), w2.astype(jnp.bfloat16),
                preferred_element_type=jnp.float32)
    h = jnp.maximum(h + b2.astype(jnp.float32), 0.0)
    out = jnp.full((num_graphs, h.shape[1]), NEG_INF, jnp.float32)
    out = out.at[batch].max(h)  # segment max (global_max_pool)
    return out


if __name__ == "__main__":
    # Small shapes: N points split across B graphs, feature channels Cin,
    # MLP([Cin + 3, H1, H2]).
    N, CIN, H1, H2, B = 64, 4, 32, 64, 2

    key = jax.random.PRNGKey(0)
    kx, kp, kw1, kb1, kw2, kb2 = jax.random.split(key, 6)

    x = jax.random.normal(kx, (N, CIN), dtype=jnp.float32)
    pos = jax.random.normal(kp, (N, 3), dtype=jnp.float32)
    # batch vector sorted by graph id (torch_geometric convention)
    batch = jnp.repeat(jnp.arange(B, dtype=jnp.int32), N // B)

    # Deterministic synthetic parameters for nn = MLP([CIN+3, H1, H2])
    w1 = jax.random.normal(kw1, (CIN + 3, H1), dtype=jnp.float32) * 0.2
    b1 = jax.random.normal(kb1, (H1,), dtype=jnp.float32) * 0.1
    w2 = jax.random.normal(kw2, (H1, H2), dtype=jnp.float32) * 0.2
    b2 = jax.random.normal(kb2, (H2,), dtype=jnp.float32) * 0.1
    params = (w1, b1, w2, b2)
    # TODO(synk): BatchNorm layers of the torch_geometric MLP are omitted
    # (inference-mode identity with synthetic params).

    out_x, out_pos, out_batch = global_sa_module(x, pos, batch, params, B)
    jax.block_until_ready((out_x, out_pos, out_batch))

    ref = _reference(x, pos, batch, params, B)
    assert out_x.shape == (B, H2) and out_pos.shape == (B, 3) and out_batch.shape == (B,)
    assert jnp.allclose(out_x, ref, atol=1e-3, rtol=1e-3), \
        float(jnp.max(jnp.abs(out_x - ref)))
    assert jnp.array_equal(out_batch, jnp.arange(B, dtype=jnp.int32))
    assert jnp.all(out_pos == 0)

    print("KERNEL_OK")
</pallas_src>

<mosaic_0001>
module attributes {stable_mosaic.version = 11 : i64} {
  func.func @global_sa_kernel(%arg0: i32, %arg1: memref<64x4xbf16, #tpu.memory_space<vmem>>, %arg2: memref<64x3xbf16, #tpu.memory_space<vmem>>, %arg3: memref<64x1xi32, #tpu.memory_space<vmem>>, %arg4: memref<4x32xbf16, #tpu.memory_space<vmem>>, %arg5: memref<3x32xbf16, #tpu.memory_space<vmem>>, %arg6: memref<1x32xf32, #tpu.memory_space<vmem>>, %arg7: memref<32x128xbf16, #tpu.memory_space<vmem>>, %arg8: memref<1x128xf32, #tpu.memory_space<vmem>>, %arg9: memref<2x128xf32, #tpu.memory_space<vmem>>) attributes {dimension_semantics = [#tpu.dimension_semantics<arbitrary>], iteration_bounds = array<i64: 1>, scalar_prefetch = 0 : i64, scratch_operands = 0 : i64, tpu.core_type = #tpu.core_type<tc>, window_params = [{transform_indices = @transform_0, window_bounds = array<i64: 64, 4>}, {transform_indices = @transform_1, window_bounds = array<i64: 64, 3>}, {transform_indices = @transform_2, window_bounds = array<i64: 64, 1>}, {pipeline_mode = #tpu.pipeline_mode<synchronous>, transform_indices = @transform_3, window_bounds = array<i64: 4, 32>}, {pipeline_mode = #tpu.pipeline_mode<synchronous>, transform_indices = @transform_4, window_bounds = array<i64: 3, 32>}, {pipeline_mode = #tpu.pipeline_mode<synchronous>, transform_indices = @transform_5, window_bounds = array<i64: 1, 32>}, {pipeline_mode = #tpu.pipeline_mode<synchronous>, transform_indices = @transform_6, window_bounds = array<i64: 32, 128>}, {pipeline_mode = #tpu.pipeline_mode<synchronous>, transform_indices = @transform_7, window_bounds = array<i64: 1, 128>}, {pipeline_mode = #tpu.pipeline_mode<synchronous>, transform_indices = @transform_8, window_bounds = array<i64: 2, 128>}]} {
    %c0_i32 = arith.constant 0 : i32
    %0 = arith.cmpi eq, %arg0, %c0_i32 : i32
    %1 = arith.extui %0 : i1 to i32
    %c0_i32_0 = arith.constant 0 : i32
    %2 = arith.cmpi ne, %1, %c0_i32_0 : i32
    scf.if %2 {
      %cst_34 = arith.constant -1.000000e+30 : f32
      %65 = vector.broadcast %cst_34 : f32 to vector<2x128xf32>
      %c0_35 = arith.constant 0 : index
      %c0_36 = arith.constant 0 : index
      %66 = vector.load %arg9[%c0_35, %c0_36] : memref<2x128xf32, #tpu.memory_space<vmem>>, vector<2x128xf32>
      tpu.vector_store %arg9[%c0_35, %c0_36], %65 {strides = array<i32>} : memref<2x128xf32, #tpu.memory_space<vmem>>, vector<2x128xf32>,
    } else {
    }
    %c0 = arith.constant 0 : index
    %c0_1 = arith.constant 0 : index
    %3 = vector.load %arg1[%c0, %c0_1] : memref<64x4xbf16, #tpu.memory_space<vmem>>, vector<64x4xbf16>
    %c0_2 = arith.constant 0 : index
    %c0_3 = arith.constant 0 : index
    %4 = vector.load %arg4[%c0_2, %c0_3] : memref<4x32xbf16, #tpu.memory_space<vmem>>, vector<4x32xbf16>
    %cst = arith.constant dense<0.000000e+00> : vector<64x32xf32>
    %5 = tpu.matmul %3, %4, %cst {dimension_numbers = #tpu.dot_dimension_numbers<[1], [0], [0], [1], [0, 0, 1, 1], [], []>} : vector<64x4xbf16>, vector<4x32xbf16>, vector<64x32xf32> -> vector<64x32xf32>
    %c0_4 = arith.constant 0 : index
    %c0_5 = arith.constant 0 : index
    %6 = vector.load %arg2[%c0_4, %c0_5] : memref<64x3xbf16, #tpu.memory_space<vmem>>, vector<64x3xbf16>
    %c0_6 = arith.constant 0 : index
    %c0_7 = arith.constant 0 : index
    %7 = vector.load %arg5[%c0_6, %c0_7] : memref<3x32xbf16, #tpu.memory_space<vmem>>, vector<3x32xbf16>
    %cst_8 = arith.constant dense<0.000000e+00> : vector<64x32xf32>
    %8 = tpu.matmul %6, %7, %cst_8 {dimension_numbers = #tpu.dot_dimension_numbers<[1], [0], [0], [1], [0, 0, 1, 1], [], []>} : vector<64x3xbf16>, vector<3x32xbf16>, vector<64x32xf32> -> vector<64x32xf32>
    %9 = arith.addf %5, %8 : vector<64x32xf32>
    %c0_9 = arith.constant 0 : index
    %c0_10 = arith.constant 0 : index
    %10 = vector.load %arg6[%c0_9, %c0_10] : memref<1x32xf32, #tpu.memory_space<vmem>>, vector<1x32xf32>
    %11 = vector.broadcast %10 : vector<1x32xf32> to vector<64x32xf32>
    %12 = arith.addf %9, %11 : vector<64x32xf32>
    %cst_11 = arith.constant 0.000000e+00 : f32
    %13 = vector.broadcast %cst_11 : f32 to vector<64x32xf32>
    %14 = arith.maximumf %12, %13 : vector<64x32xf32>
    %15 = arith.truncf %14 : vector<64x32xf32> to vector<64x32xbf16>
    %c0_12 = arith.constant 0 : index
    %c0_13 = arith.constant 0 : index
    %16 = vector.load %arg7[%c0_12, %c0_13] : memref<32x128xbf16, #tpu.memory_space<vmem>>, vector<32x128xbf16>
    %cst_14 = arith.constant dense<0.000000e+00> : vector<64x128xf32>
    %17 = tpu.matmul %15, %16, %cst_14 {dimension_numbers = #tpu.dot_dimension_numbers<[1], [0], [0], [1], [0, 0, 1, 1], [], []>} : vector<64x32xbf16>, vector<32x128xbf16>, vector<64x128xf32> -> vector<64x128xf32>
    %c0_15 = arith.constant 0 : index
    %c0_16 = arith.constant 0 : index
    %18 = vector.load %arg8[%c0_15, %c0_16] : memref<1x128xf32, #tpu.memory_space<vmem>>, vector<1x128xf32>
    %19 = vector.broadcast %18 : vector<1x128xf32> to vector<64x128xf32>
    %20 = arith.addf %17, %19 : vector<64x128xf32>
    %cst_17 = arith.constant 0.000000e+00 : f32
    %21 = vector.broadcast %cst_17 : f32 to vector<64x128xf32>
    %22 = arith.maximumf %20, %21 : vector<64x128xf32>
    %c0_18 = arith.constant 0 : index
    %c0_19 = arith.constant 0 : index
    %23 = vector.load %arg3[%c0_18, %c0_19] : memref<64x1xi32, #tpu.memory_space<vmem>>, vector<64x1xi32>
    %c64_i32 = arith.constant 64 : i32
    %24 = arith.muli %arg0, %c64_i32 : i32
    %25 = tpu.iota {dimensions = array<i32: 0>} : vector<64x1xi32>
    %26 = vector.broadcast %24 : i32 to vector<64x1xi32>
    %27 = arith.addi %26, %25 : vector<64x1xi32>
    %c64_i32_20 = arith.constant 64 : i32
    %28 = vector.broadcast %c64_i32_20 : i32 to vector<64x1xi32>
    %29 = arith.cmpi slt, %27, %28 : vector<64x1xi32>
    %cst_21 = arith.constant -1.000000e+30 : f32
    %30 = vector.shape_cast %29 : vector<64x1xi1> to vector<64x1xi1>
    %31 = vector.broadcast %30 : vector<64x1xi1> to vector<64x128xi1>
    %32 = vector.broadcast %cst_21 : f32 to vector<64x128xf32>
    %33 = arith.select %31, %22, %32 : vector<64x128xi1>, vector<64x128xf32>
    %34 = tpu.iota {dimensions = array<i32: 0>} : vector<2x128xi32>
    %cst_22 = arith.constant -1.000000e+30 : f32
    %35 = vector.broadcast %cst_22 : f32 to vector<2x128xf32>
    %c0_i32_23 = arith.constant 0 : i32
    %36 = vector.broadcast %c0_i32_23 : i32 to vector<64x1xi32>
    %37 = arith.cmpi eq, %23, %36 : vector<64x1xi32>
    %cst_24 = arith.constant -1.000000e+30 : f32
    %38 = vector.shape_cast %37 : vector<64x1xi1> to vector<64x1xi1>
    %39 = vector.broadcast %38 : vector<64x1xi1> to vector<64x128xi1>
    %40 = vector.broadcast %cst_24 : f32 to vector<64x128xf32>
    %41 = arith.select %39, %33, %40 : vector<64x128xi1>, vector<64x128xf32>
    %cst_25 = arith.constant dense<0xFF800000> : vector<128xf32>
    %42 = vector.multi_reduction <maximumf>, %41, %cst_25 [0] : vector<64x128xf32> to vector<128xf32>
    %43 = vector.shape_cast %42 : vector<128xf32> to vector<1x128xf32>
    %c0_i32_26 = arith.constant 0 : i32
    %44 = vector.broadcast %c0_i32_26 : i32 to vector<2x128xi32>
    %45 = arith.cmpi eq, %34, %44 : vector<2x128xi32>
    %46 = vector.shape_cast %43 : vector<1x128xf32> to vector<1x128xf32>
    %47 = vector.broadcast %46 : vector<1x128xf32> to vector<2x128xf32>
    %48 = arith.select %45, %47, %35 : vector<2x128xi1>, vector<2x128xf32>
    %c1_i32 = arith.constant 1 : i32
    %49 = vector.broadcast %c1_i32 : i32 to vector<64x1xi32>
    %50 = arith.cmpi eq, %23, %49 : vector<64x1xi32>
    %cst_27 = arith.constant -1.000000e+30 : f32
    %51 = vector.shape_cast %50 : vector<64x1xi1> to vector<64x1xi1>
    %52 = vector.broadcast %51 : vector<64x1xi1> to vector<64x128xi1>
    %53 = vector.broadcast %cst_27 : f32 to vector<64x128xf32>
    %54 = arith.select %52, %33, %53 : vector<64x128xi1>, vector<64x128xf32>
    %cst_28 = arith.constant dense<0xFF800000> : vector<128xf32>
    %55 = vector.multi_reduction <maximumf>, %54, %cst_28 [0] : vector<64x128xf32> to vector<128xf32>
    %56 = vector.shape_cast %55 : vector<128xf32> to vector<1x128xf32>
    %c1_i32_29 = arith.constant 1 : i32
    %57 = vector.broadcast %c1_i32_29 : i32 to vector<2x128xi32>
    %58 = arith.cmpi eq, %34, %57 : vector<2x128xi32>
    %59 = vector.shape_cast %56 : vector<1x128xf32> to vector<1x128xf32>
    %60 = vector.broadcast %59 : vector<1x128xf32> to vector<2x128xf32>
    %61 = arith.select %58, %60, %48 : vector<2x128xi1>, vector<2x128xf32>
    %c0_30 = arith.constant 0 : index
    %c0_31 = arith.constant 0 : index
    %62 = vector.load %arg9[%c0_30, %c0_31] : memref<2x128xf32, #tpu.memory_space<vmem>>, vector<2x128xf32>
    %63 = arith.maximumf %62, %61 : vector<2x128xf32>
    %c0_32 = arith.constant 0 : index
    %c0_33 = arith.constant 0 : index
    %64 = vector.load %arg9[%c0_32, %c0_33] : memref<2x128xf32, #tpu.memory_space<vmem>>, vector<2x128xf32>
    tpu.vector_store %arg9[%c0_32, %c0_33], %63 {strides = array<i32>} : memref<2x128xf32, #tpu.memory_space<vmem>>, vector<2x128xf32>,
    return
  }
  func.func @transform_0(%arg0: i32) -> (i32, i32) {
    %c0_i32 = arith.constant 0 : i32
    %c0_i32_0 = arith.constant 0 : i32
    return %arg0, %c0_i32 : i32, i32
  }
  func.func @transform_1(%arg0: i32) -> (i32, i32) {
    %c0_i32 = arith.constant 0 : i32
    %c0_i32_0 = arith.constant 0 : i32
    return %arg0, %c0_i32 : i32, i32
  }
  func.func @transform_2(%arg0: i32) -> (i32, i32) {
    %c0_i32 = arith.constant 0 : i32
    %c0_i32_0 = arith.constant 0 : i32
    return %arg0, %c0_i32 : i32, i32
  }
  func.func @transform_3(%arg0: i32) -> (i32, i32) {
    %c0_i32 = arith.constant 0 : i32
    %c0_i32_0 = arith.constant 0 : i32
    %c0_i32_1 = arith.constant 0 : i32
    return %c0_i32, %c0_i32_0 : i32, i32
  }
  func.func @transform_4(%arg0: i32) -> (i32, i32) {
    %c0_i32 = arith.constant 0 : i32
    %c0_i32_0 = arith.constant 0 : i32
    %c0_i32_1 = arith.constant 0 : i32
    return %c0_i32, %c0_i32_0 : i32, i32
  }
  func.func @transform_5(%arg0: i32) -> (i32, i32) {
    %c0_i32 = arith.constant 0 : i32
    %c0_i32_0 = arith.constant 0 : i32
    %c0_i32_1 = arith.constant 0 : i32
    return %c0_i32, %c0_i32_0 : i32, i32
  }
  func.func @transform_6(%arg0: i32) -> (i32, i32) {
    %c0_i32 = arith.constant 0 : i32
    %c0_i32_0 = arith.constant 0 : i32
    %c0_i32_1 = arith.constant 0 : i32
    return %c0_i32, %c0_i32_0 : i32, i32
  }
  func.func @transform_7(%arg0: i32) -> (i32, i32) {
    %c0_i32 = arith.constant 0 : i32
    %c0_i32_0 = arith.constant 0 : i32
    %c0_i32_1 = arith.constant 0 : i32
    return %c0_i32, %c0_i32_0 : i32, i32
  }
  func.func @transform_8(%arg0: i32) -> (i32, i32) {
    %c0_i32 = arith.constant 0 : i32
    %c0_i32_0 = arith.constant 0 : i32
    %c0_i32_1 = arith.constant 0 : i32
    return %c0_i32, %c0_i32_0 : i32, i32
  }
}

</mosaic_0001>

<bundles_post_ra>
// kernel: tpu_custom_call.1
= control target key start
LH: loop header
LB: loop body
LE: loop exit
PB: predicated region body
PF: predicated region fallthrough
CT: control target
= control target key end

     0   :  { %vm87_vm0 = vcmask 1040384   ;;  %vm88_vm1 = vcmask 1041408   ;;  %v737_v2 = vmov 65535   ;;  %vm74_vm2 = vcmask 23552   ;;  %s900_s0 = inlined_call_operand.vmem [shape: bf16[64,4], index: 0, kind: input, shape index: {}]   ;;  %s901_s1 = inlined_call_operand.vmem [shape: bf16[64,3], index: 1, kind: input, shape index: {}]   ;;  %s902_s2 = inlined_call_operand.vmem [shape: s32[64,1], index: 2, kind: input, shape index: {}]   ;;  %s903_s3 = inlined_call_operand.vmem [shape: bf16[4,32], index: 3, kind: input, shape index: {}]   ;;  %s904_s4 = inlined_call_operand.vmem [shape: bf16[3,32], index: 4, kind: input, shape index: {}]   ;;  %s905_s5 = inlined_call_operand.vmem [shape: f32[1,32], index: 5, kind: input, shape index: {}]   ;;  %s906_s6 = inlined_call_operand.vmem [shape: bf16[32,128], index: 6, kind: input, shape index: {}]   ;;  %s907_s7 = inlined_call_operand.vmem [shape: f32[1,128], index: 7, kind: input, shape index: {}]   ;;  %s908_s8 = inlined_call_operand.hbm [shape: f32[2,128], index: 8, kind: output, shape index: {}]  }
   0x1   :  { %v53_v0 = vld [vmem:[%s904_s4] sm:$0x3]  ;;  %v89_v3 = vsel %vm87_vm0, 4294967295, %v737_v2  ;;  %v704_v7 = vld [vmem:[%s901_s1 + $0x8] sm:$0xff]   ;;  %v707_v10 = vld [vmem:[%s901_s1 + $0x10] sm:$0xff]   ;;  %vm179_vm3 = vcmask 31744  }
   0x2   :  { %v703_v1 = vld [vmem:[%s901_s1] sm:$0xff]   ;;  %v90_v4 = vsel %vm88_vm1, %v89_v3, 0  ;;  %v708_v11 = vld [vmem:[%s901_s1 + $0x18] sm:$0xff]   ;;  %660 = vmatprep.mubr.msk.bf16.mxu1 %vm74_vm2, %v707_v10 }
   0x3   :  { %656 = vmatprep.mubr.msk.bf16.mxu0 %vm74_vm2, %v703_v1  ;;  %v92_v5 = vand.u32 %v90_v4, %v53_v0  ;;  %v44_v6 = vld [vmem:[%s903_s3] sm:$0x3] }
   0x4   :  { %v705_v8 = vld [vmem:[%s900_s0] sm:$0xff]   ;;  %v193_v9 = vsel %vm88_vm1, %v44_v6, 0 }
   0x5   :  { %654 = vmatprep.subr.bf16.mxu0 %v92_v5  ;;  %686 = vmatprep.subr.bf16.mxu1 %v92_v5 }
   0x6   :  { %655 = vmatpush3.bf16.msra.mxu0 %v92_v5  ;;  %687 = vmatpush3.bf16.msra.mxu1 %v92_v5 }
   0x7   :  { %696 = vmatprep.subr.msk.bf16.mxu0 %vm88_vm1, %v44_v6 }
   0x9   :  { %657 = vmatmul.mubr.msk.bf16.vlgmr.msra.gmra.mrb[0].mxu0 %vm74_vm2, %v704_v7  ;;  %661 = vmatmul.mubr.msk.bf16.vlgmr.msra.gmra.mrb[0].mxu1 %vm74_vm2, %v708_v11 }
   0xa   :  { %665 = vmatpush3.bf16.msra.mxu0 %v193_v9  ;;  %666 = vmatprep.mubr.msk.bf16.mxu0 %vm179_vm3, %v705_v8 }
   0xb   :  { %13 = vsyncpa [#allocation3], 0  ;;  %v706_v12 = vld [vmem:[%s900_s0 + $0x8] sm:$0xff]   ;;  %v709_v13 = vld [vmem:[%s900_s0 + $0x10] sm:$0xff]   ;;  %v738_v20 = vmov 0  }
   0xc   :  { %v710_v14 = vld [vmem:[%s900_s0 + $0x18] sm:$0xff]   ;;  %v711_v15 = vld [vmem:[%s906_s6] sm:$0xff]   ;;  %v712_v16 = vld [vmem:[%s906_s6 + $0x8] sm:$0xff]   ;;  %702 = vset.pattern.permute.xlu1 %v738_v20  ;;  %701 = vset.pattern.permute.xlu0 %v738_v20 }
   0xd   :  { %674 = vmatprep.subr.bf16.mxu1 %v711_v15  ;;  %v398_v17 = vld [vmem:[%s902_s2 + $0x10] sm:$0xff]  ;;  %v396_v18 = vld [vmem:[%s902_s2] sm:$0xff]  ;;  %v399_v19 = vld [vmem:[%s902_s2 + $0x18] sm:$0xff] }
   0xe   :  { %675 = vmatpush3.bf16.msra.mxu1 %v711_v15  ;;  %vm457_vm4 = vcmp.eq.s32.totalorder %v398_v17, 0  ;;  %vm455_vm5 = vcmp.eq.s32.totalorder %v396_v18, 0  ;;  %vm458_vm6 = vcmp.eq.s32.totalorder %v399_v19, 0  ;;  %v397_v21 = vld [vmem:[%s902_s2 + $0x8] sm:$0xff]  ;;  %v400_v25 = vld [vmem:[%s902_s2 + $0x20] sm:$0xff]  ;;  %v403_v28 = vld [vmem:[%s902_s2 + $0x38] sm:$0xff] }
   0xf   :  { %676 = vmatprep.subr.bf16.mxu1 %v712_v16  ;;  %v465_v22 = vsel %vm457_vm4, 1, %v738_v20  ;;  %v463_v23 = vsel %vm455_vm5, 1, %v738_v20  ;;  %vm456_vm7 = vcmp.eq.s32.totalorder %v397_v21, 0  ;;  %v401_v24 = vld [vmem:[%s902_s2 + $0x28] sm:$0xff]  ;;  %v466_v26 = vsel %vm458_vm6, 1, %v738_v20  ;;  %v402_v29 = vld [vmem:[%s902_s2 + $0x30] sm:$0xff] }
  0x10   :  { %478 = vperm.xlu1 %702, %v465_v22   ;;  %472 = vperm.xlu0 %701, %v463_v23   ;;  %v464_v27 = vsel %vm456_vm7, 1, %v738_v20  ;;  %vm460_vm8 = vcmp.eq.s32.totalorder %v401_v24, 0  ;;  %vm459_vm9 = vcmp.eq.s32.totalorder %v400_v25, 0  ;;  %vm462_vm10 = vcmp.eq.s32.totalorder %v403_v28, 0  ;;  %v630_v46 = vld [vmem:[%s905_s5] ss:$0 sm:$0xff] }
  0x11   :  { %v468_v30 = vsel %vm460_vm8, 1, %v738_v20  ;;  %v467_v31 = vsel %vm459_vm9, 1, %v738_v20  ;;  %vm461_vm11 = vcmp.eq.s32.totalorder %v402_v29, 0  ;;  %v470_v32 = vsel %vm462_vm10, 1, %v738_v20 }
  0x12   :  { %677 = vmatpush3.bf16.msra.mxu1 %v712_v16  ;;  %v469_v33 = vsel %vm461_vm11, 1, %v738_v20  ;;  %vm527_vm12 = vcmp.eq.s32.totalorder %v397_v21, 1  ;;  %vm526_vm13 = vcmp.eq.s32.totalorder %v396_v18, 1  ;;  %vm529_vm14 = vcmp.eq.s32.totalorder %v399_v19, 1 }
  0x13   :  { %v535_v34 = vsel %vm527_vm12, 1, %v738_v20  ;;  %v534_v35 = vsel %vm526_vm13, 1, %v738_v20  ;;  %vm528_vm15 = vcmp.eq.s32.totalorder %v398_v17, 1  ;;  %v537_v36 = vsel %vm529_vm14, 1, %v738_v20 }
  0x14   :  { %481 = vperm.xlu1 %702, %v466_v26   ;;  %475 = vperm.xlu0 %701, %v464_v27   ;;  %v536_v37 = vsel %vm528_vm15, 1, %v738_v20  ;;  %vm531_vm0 = vcmp.eq.s32.totalorder %v401_v24, 1  ;;  %vm530_vm1 = vcmp.eq.s32.totalorder %v400_v25, 1  ;;  %vm533_vm2 = vcmp.eq.s32.totalorder %v403_v28, 1 }
  0x15   :  { %667 = vmatmul.mubr.msk.bf16.vlgmr.msra.gmra.mrb[0].mxu0 %vm179_vm3, %v706_v12  ;;  %v539_v38 = vsel %vm531_vm0, 1, %v738_v20  ;;  %v538_v39 = vsel %vm530_vm1, 1, %v738_v20  ;;  %v541_v40 = vsel %vm533_vm2, 1, %v738_v20  ;;  %vm310_vm4 = vcmask 261120  }
  0x16   :  { %670 = vmatprep.mubr.msk.bf16.mxu0 %vm179_vm3, %v709_v13  ;;  %v739_v15 = vmov -1e+30  }
  0x17   :  { %35 = vst [vmem:[#allocation2] sm:$0x3] %v739_v15 }
  0x18   :  { %487 = vperm.xlu1 %702, %v468_v30   ;;  %484 = vperm.xlu0 %701, %v467_v31  }
  0x1c   :  { %493 = vperm.xlu1 %702, %v470_v32   ;;  %490 = vperm.xlu0 %701, %v469_v33  }
  0x1d   :  { %671 = vmatmul.mubr.msk.bf16.gmra.mrb[4].mxu0 %vm179_vm3, %v710_v14  ;;  %vm532_vm3 = vcmp.eq.s32.totalorder %v402_v29, 1  ;;  %v631_v29 = vld [vmem:[%s907_s7] ss:$0 sm:$0xff]  ;;  %s740_s7 = smov [#allocation2]  }
  0x1e   :  { %v540_v41 = vsel %vm532_vm3, 1, %v738_v20  ;;  %s606_s18 = sshll.u32 %s740_s7, 4  ;;  %s607_s18 = int_to_ptr.vmem [resolvable:$true] %s606_s18 }
  0x1f   :  { %s713_s19 = scalar_lea.vmem %s607_s18, 32  ;;  %p718_p1 = scmp.lt.s32.totalorder %s607_s18, %s607_s18 }
  0x20   :  { %546 = vperm.xlu1 %702, %v535_v34   ;;  %543 = vperm.xlu0 %701, %v534_v35   ;;  %p714_p0 = scmp.ne.s32.totalorder %s607_s18, %s713_s19  ;;  %p719_p2 = scmp.lt.s32.totalorder %s713_s19, %s713_s19 }
  0x22   :  { %p720_p3 = por %p719_p2, %p718_p1 }
  0x24   :  { %552 = vperm.xlu1 %702, %v537_v36   ;;  %549 = vperm.xlu0 %701, %v536_v37   ;;  %p721_p4 = pnand %p720_p3, %p714_p0 }
  0x28   :  { %558 = vperm.xlu1 %702, %v539_v38   ;;  %555 = vperm.xlu0 %701, %v538_v39  }
  0x2c   :  { %564 = vperm.xlu1 %702, %v541_v40   ;;  %561 = vperm.xlu0 %701, %v540_v41  }
  0x8f   :  { %v479_v16 = vpop.permute.xlu1 %478  ;;  %v473_v17 = vpop.permute.xlu0 %472 }
  0x90   :  { %vm497_vm5 = vcmp.eq.s32.totalorder %v479_v16, 1  ;;  %vm495_vm6 = vcmp.eq.s32.totalorder %v473_v17, 1 }
  0x93   :  { %v482_v18 = vpop.permute.xlu1 %481  ;;  %v860_v19 = vpop.permute.xlu0 %475 }
  0x94   :  { %vm498_vm7 = vcmp.eq.s32.totalorder %v482_v18, 1  ;;  %vm496_vm11 = vcmp.eq.s32.totalorder %v860_v19, 1 }
  0x97   :  { %v862_v20 = vpop.permute.xlu1 %487  ;;  %v485_v21 = vpop.permute.xlu0 %484 }
  0x98   :  { %vm499_vm8 = vcmp.eq.s32.totalorder %v485_v21, 1  ;;  %vm500_vm3 = vcmp.eq.s32.totalorder %v862_v20, 1 }
  0x9b   :  { %v494_v22 = vpop.permute.xlu1 %493  ;;  %v491_v23 = vpop.permute.xlu0 %490 }
  0x9c   :  { %vm502_vm9 = vcmp.eq.s32.totalorder %v494_v22, 1  ;;  %vm501_vm10 = vcmp.eq.s32.totalorder %v491_v23, 1 }
  0x9f   :  { %v864_v24 = vpop.permute.xlu1 %546  ;;  %v544_v25 = vpop.permute.xlu0 %543 }
  0xa0   :  { %vm566_vm12 = vcmp.eq.s32.totalorder %v544_v25, 1  ;;  %vm567_vm2 = vcmp.eq.s32.totalorder %v864_v24, 1 }
  0xa3   :  { %v553_v26 = vpop.permute.xlu1 %552  ;;  %v550_v27 = vpop.permute.xlu0 %549 }
  0xa4   :  { %vm569_vm13 = vcmp.eq.s32.totalorder %v553_v26, 1  ;;  %vm568_vm14 = vcmp.eq.s32.totalorder %v550_v27, 1  ;;  %v405_v27 = vlaneseq }
  0xa6   :  { %v406_v19 = vshrl.u32 %v405_v27, 7 }
  0xa7   :  { %v869_v31 = vpop.permute.xlu1 %558  ;;  %v556_v33 = vpop.permute.xlu0 %555 }
  0xa8   :  { %vm570_vm15 = vcmp.eq.s32.totalorder %v556_v33, 1 }
  0xab   :  { %v565_v38 = vpop.permute.xlu1 %564  ;;  %v562_v40 = vpop.permute.xlu0 %561 }
  0xac   :  { %vm573_vm0 = vcmp.eq.s32.totalorder %v565_v38, 1  ;;  %vm572_vm1 = vcmp.eq.s32.totalorder %v562_v40, 1 }
  0xdc   :  { %v662_v42 = vpop.f32.mrb[0].mxu1 }
  0xdd   :  { %v144_v43 = vpop.f32.mrb[1].mxu1 }
  0xde   :  { %v663_v44 = vpop.f32.mrb[2].mxu1 }
  0xdf   :  { %v147_v45 = vpop.f32.mrb[3].mxu1 }
  0xe8   :  { %v668_v47 = vpop.f32.mrb[0].mxu0 }
  0xe9   :  { %v269_v48 = vadd.f32 %v668_v47, %v630_v46  ;;  %v229_v49 = vpop.f32.mrb[1].mxu0 }
  0xea   :  { %v267_v50 = vadd.f32 %v630_v46, %v229_v49  ;;  %v669_v51 = vpop.f32.mrb[2].mxu0 }
  0xeb   :  { %v270_v52 = vadd.f32 %v669_v51, %v630_v46  ;;  %v232_v53 = vpop.f32.mrb[3].mxu0  ;;  %v277_v55 = vmax.f32 %v269_v48, 0.0 }
  0xec   :  { %v268_v54 = vadd.f32 %v630_v46, %v232_v53  ;;  %v275_v57 = vmax.f32 %v267_v50, 0.0 }
  0xed   :  { %v278_v56 = vmax.f32 %v270_v52, 0.0 }
  0xee   :  { %v276_v58 = vmax.f32 %v268_v54, 0.0 }
  0xef   :  { %v284_v59 = vpack.c.bf16 %v278_v56, %v277_v55 }
  0xf0   :  { %v283_v60 = vpack.c.bf16 %v276_v58, %v275_v57  ;;  %v672_v61 = vpop.f32.mrb[4].mxu0 }
  0xf1   :  { %v254_v62 = vadd.f32 %v672_v61, %v662_v42  ;;  %v245_v63 = vpop.f32.mrb[5].mxu0 }
  0xf2   :  { %v246_v0 = vadd.f32 %v245_v63, %v144_v43  ;;  %v673_v1 = vpop.f32.mrb[6].mxu0  ;;  %678 = vmatprep.mubr.msk.bf16.mxu1 %vm310_vm4, %v283_v60 }
  0xf3   :  { %v273_v2 = vadd.f32 %v630_v46, %v254_v62  ;;  %v257_v3 = vadd.f32 %v673_v1, %v663_v44  ;;  %v248_v4 = vpop.f32.mrb[7].mxu0  ;;  %679 = vmatmul.mubr.msk.bf16.vlgmr.msra.gmra.mrb[4].mxu1 %vm310_vm4, %v284_v59 }
  0xf4   :  { %v271_v5 = vadd.f32 %v630_v46, %v246_v0  ;;  %v249_v6 = vadd.f32 %v248_v4, %v147_v45 }
  0xf5   :  { %v274_v7 = vadd.f32 %v630_v46, %v257_v3  ;;  %v281_v9 = vmax.f32 %v273_v2, 0.0 }
  0xf6   :  { %v272_v8 = vadd.f32 %v630_v46, %v249_v6  ;;  %v279_v11 = vmax.f32 %v271_v5, 0.0 }
  0xf7   :  { %v282_v10 = vmax.f32 %v274_v7, 0.0 }
  0xf8   :  { %v280_v12 = vmax.f32 %v272_v8, 0.0 }
  0xf9   :  { %v286_v13 = vpack.c.bf16 %v282_v10, %v281_v9 }
  0xfa   :  { %v285_v14 = vpack.c.bf16 %v280_v12, %v279_v11 }
  0xfc   :  { %682 = vmatprep.mubr.msk.bf16.mxu1 %vm310_vm4, %v285_v14 }
  0xfd   :  { %683 = vmatmul.mubr.msk.bf16.gmra.mrb[8].mxu1 %vm310_vm4, %v286_v13  ;;  %vm571_vm4 = vcmp.eq.s32.totalorder %v869_v31, 1 }
 0x1c6   :  { %v680_v28 = vpop.f32.mrb[4].mxu1 }
 0x1c7   :  { %v357_v30 = vpop.f32.mrb[5].mxu1  ;;  %v366_v35 = vadd.f32 %v680_v28, %v631_v29 }
 0x1c8   :  { %v681_v32 = vpop.f32.mrb[6].mxu1  ;;  %v358_v36 = vadd.f32 %v631_v29, %v357_v30 }
 0x1c9   :  { %v360_v34 = vpop.f32.mrb[7].mxu1  ;;  %v369_v37 = vadd.f32 %v681_v32, %v631_v29  ;;  %v390_v39 = vmax.f32 %v366_v35, 0.0 }
 0x1ca   :  { %v388_v41 = vmax.f32 %v358_v36, 0.0  ;;  %v361_v44 = vadd.f32 %v631_v29, %v360_v34 }
 0x1cb   :  { %v391_v42 = vmax.f32 %v369_v37, 0.0  ;;  %v505_v47 = vsel %vm497_vm5, %v390_v39, -1e+30  ;;  %v576_v48 = vsel %vm568_vm14, %v390_v39, -1e+30  ;;  %vm524_vm5 = vcmp.eq.s32.totalorder %v406_v19, 0 }
 0x1cc   :  { %v503_v51 = vsel %vm495_vm6, %v388_v41, -1e+30  ;;  %v574_v52 = vsel %vm566_vm12, %v388_v41, -1e+30  ;;  %v389_v60 = vmax.f32 %v361_v44, 0.0  ;;  %vm595_vm6 = vcmp.eq.s32.totalorder %v406_v19, 1 }
 0x1cd   :  { %v506_v56 = vsel %vm498_vm7, %v391_v42, -1e+30  ;;  %v577_v57 = vsel %vm569_vm13, %v391_v42, -1e+30  ;;  %v597_v37 = vld [vmem:[#allocation2] sm:$0x3] }
 0x1ce   :  { %v504_v11 = vsel %vm496_vm11, %v389_v60, -1e+30  ;;  %v575_v12 = vsel %vm567_vm2, %v389_v60, -1e+30 }
 0x1d0   :  { %v684_v43 = vpop.f32.mrb[8].mxu1 }
 0x1d1   :  { %v382_v45 = vadd.f32 %v684_v43, %v631_v29  ;;  %v373_v46 = vpop.f32.mrb[9].mxu1 }
 0x1d2   :  { %v374_v49 = vadd.f32 %v631_v29, %v373_v46  ;;  %v685_v50 = vpop.f32.mrb[10].mxu1 }
 0x1d3   :  { %v394_v53 = vmax.f32 %v382_v45, 0.0  ;;  %v385_v54 = vadd.f32 %v685_v50, %v631_v29  ;;  %v376_v55 = vpop.f32.mrb[11].mxu1 }
 0x1d4   :  { %v392_v58 = vmax.f32 %v374_v49, 0.0  ;;  %v377_v59 = vadd.f32 %v631_v29, %v376_v55 }
 0x1d5   :  { %v509_v61 = vsel %vm501_vm10, %v394_v53, -1e+30  ;;  %v580_v62 = vsel %vm572_vm1, %v394_v53, -1e+30  ;;  %v395_v63 = vmax.f32 %v385_v54, 0.0 }
 0x1d6   :  { %v513_v0 = vmax.f32 %v505_v47, %v509_v61  ;;  %v584_v1 = vmax.f32 %v576_v48, %v580_v62  ;;  %v507_v2 = vsel %vm499_vm8, %v392_v58, -1e+30  ;;  %v578_v3 = vsel %vm570_vm15, %v392_v58, -1e+30 }
 0x1d7   :  { %v511_v4 = vmax.f32 %v503_v51, %v507_v2  ;;  %v582_v5 = vmax.f32 %v574_v52, %v578_v3  ;;  %v510_v6 = vsel %vm502_vm9, %v395_v63, -1e+30  ;;  %v581_v7 = vsel %vm573_vm0, %v395_v63, -1e+30 }
 0x1d8   :  { %v514_v8 = vmax.f32 %v506_v56, %v510_v6  ;;  %v585_v9 = vmax.f32 %v577_v57, %v581_v7  ;;  %v393_v10 = vmax.f32 %v377_v59, 0.0 }
 0x1da   :  { %v516_v13 = vmax.f32 %v513_v0, %v514_v8  ;;  %v587_v14 = vmax.f32 %v584_v1, %v585_v9  ;;  %v508_v15 = vsel %vm500_vm3, %v393_v10, -1e+30  ;;  %v579_v16 = vsel %vm571_vm4, %v393_v10, -1e+30 }
 0x1db   :  { %v512_v17 = vmax.f32 %v504_v11, %v508_v15  ;;  %v583_v18 = vmax.f32 %v575_v12, %v579_v16 }
 0x1dd   :  { %v515_v21 = vmax.f32 %v511_v4, %v512_v17  ;;  %v586_v22 = vmax.f32 %v582_v5, %v583_v18 }
 0x1df   :  { %v517_v23 = vmax.f32 %v515_v21, %v516_v13  ;;  %v588_v24 = vmax.f32 %v586_v22, %v587_v14 }
 0x1e1   :  { %v518_v25 = vrot.slane %v517_v23, 4  ;;  %v589_v26 = vrot.slane %v588_v24, 4 }
 0x1e3   :  { %v519_v20 = vmax.f32 %v517_v23, %v518_v25  ;;  %v590_v28 = vmax.f32 %v588_v24, %v589_v26 }
 0x1e5   :  { %v520_v29 = vrot.slane %v519_v20, 2  ;;  %v591_v30 = vrot.slane %v590_v28, 2 }
 0x1e7   :  { %v521_v31 = vmax.f32 %v519_v20, %v520_v29  ;;  %v592_v32 = vmax.f32 %v590_v28, %v591_v30 }
 0x1e9   :  { %v522_v33 = vrot.slane %v521_v31, 1  ;;  %v593_v34 = vrot.slane %v592_v32, 1 }
 0x1eb   :  { %v523_v35 = vmax.f32 %v521_v31, %v522_v33  ;;  %v594_v36 = vmax.f32 %v592_v32, %v593_v34 }
 0x1ed   :  { %v525_v38 = vsel %vm524_vm5, %v523_v35, -1e+30 }
 0x1ee   :  { %v596_v39 = vsel %vm595_vm6, %v594_v36, %v525_v38 }
 0x1ef   :  { %v598_v40 = vmax.f32 %v597_v37, %v596_v39 }
 0x1f1   :  { %599 = vst [vmem:[#allocation2] sm:$0x3] %v598_v40 }
 0x1f2   :  { %724 = shalt.err (!%p721_p4)
}
 0x1f3   :  { %s725_s21 = scalar_lea.hbm %s908_s8, 32 }
 0x1f4   :  { %p726_p5 = scmp.ne.s32.totalorder %s908_s8, %s725_s21  ;;  %p729_p6 = scmp.lt.u32.totalorder %s725_s21, %s908_s8 }
 0x1f6   :  { %p731_p7 = pnand %p729_p6, %p726_p5 }
 0x1f8   :  { %734 = shalt.err (!%p731_p7)
}
 0x1f9   :  { %609 = dma.vmem_to_hbm [thread:$0]  %s607_s18, 32, %s908_s8, [#allocation3]  }
 0x1fa   :  { %735 = dma.done.wait [#allocation3], 32  }
 0x1fb   :  { %736 = vsyncadd [#allocation3], 4294967264 }
 0x1fc   :  { %613 = vsyncpa [#allocation3], 1 }

</bundles_post_ra>
